<compile_context>
chip_gen: v7x
topology: tpu7x:2x2x1
jax: 0.10.0
libtpu: 0.0.40
codegen_flags: <defaults>
</compile_context>

<pallas_src>
import functools

import jax
import jax.numpy as jnp
from jax.experimental import pallas as pl
from jax.experimental.pallas import tpu as pltpu


def conv_bn_silu_kernel(w_ref, p_ref, mean_ref, g_ref, b_ref, o_ref, *, eps, inv_m):
    """One fused channel-tile: conv-as-matmul + BatchNorm(batch stats) + SiLU.

    w_ref:    (TC, K)   flattened conv weights for this channel tile
    p_ref:    (K, Mp)   im2col patches, Mp = lane-padded N*Ho*Wo
    mean_ref: (TC, 1)   precomputed per-channel conv-output mean (algebraic)
    g_ref:    (TC, 1)   BN gamma
    b_ref:    (TC, 1)   BN beta
    o_ref:    (TC, Mp)  output tile (channel-major, lane-dense)
    """
    # Single MXU matmul with f32 accumulation.
    y = jnp.dot(w_ref[...], p_ref[...], preferred_element_type=jnp.float32)

    # BatchNorm2d (training mode): per-channel *biased* stats over all batch and
    # spatial positions.  E[y] comes in precomputed (tiny algebraic matvec in
    # the wrapper); only the sum-of-squares needs an in-kernel lane reduction.
    # Zero-padded M columns have y == 0 exactly, so they add nothing; inv_m is
    # 1/real_M.
    s1 = mean_ref[...]                                       # E[y]    (TC, 1)
    s2 = jnp.sum(y * y, axis=-1, keepdims=True) * inv_m      # E[y^2]  (TC, 1)
    var = jnp.maximum(s2 - s1 * s1, 0.0)
    scale = g_ref[...] * jax.lax.rsqrt(var + eps)
    shift = b_ref[...] - s1 * scale
    z = y * scale + shift

    # SiLU: z * sigmoid(z), with sigmoid via a single EUP tanh push.
    sig = 0.5 * (jnp.tanh(0.5 * z) + 1.0)
    o_ref[...] = (z * sig).astype(o_ref.dtype)


def conv_block_forward(x_nchw, w_oihw, gamma, beta, *, stride=1, padding=0,
                       eps=1e-5, use_bf16_matmul=False):
    """NCHW in / NCHW out, matching the PyTorch ConvBlock.forward."""
    N, Cin, H, W = x_nchw.shape
    Cout, _, KH, KW = w_oihw.shape

    xp = x_nchw
    if padding:
        xp = jnp.pad(xp, ((0, 0), (0, 0), (padding, padding), (padding, padding)))
    Hp, Wp = H + 2 * padding, W + 2 * padding
    Ho = (Hp - KH) // stride + 1
    Wo = (Wp - KW) // stride + 1
    K = Cin * KH * KW
    M = N * Ho * Wo
    Mp = pl.cdiv(M, 128) * 128          # lane-dense padding (e.g. 392 -> 512)
    inv_m = 1.0 / M                      # stats use the REAL element count

    # im2col in the wrapper (XLA fuses this gather): (K, M) with
    #   K ordered (cin, kh, kw) to match w.reshape(Cout, K),
    #   M ordered (n, h, w)   so it is lane-dense inside the kernel.
    cols = []
    for kh in range(KH):
        for kw in range(KW):
            cols.append(xp[:, :,
                           kh:kh + stride * (Ho - 1) + 1:stride,
                           kw:kw + stride * (Wo - 1) + 1:stride])  # (N,Cin,Ho,Wo)
    patches = jnp.stack(cols, axis=2)                  # (N, Cin, KH*KW, Ho, Wo)
    patches = patches.transpose(1, 2, 0, 3, 4).reshape(K, M).astype(jnp.float32)
    if Mp != M:
        patches = jnp.pad(patches, ((0, 0), (0, Mp - M)))  # zero pad -> stats safe

    w2 = w_oihw.reshape(Cout, K).astype(jnp.float32)

    # Algebraic per-channel conv-output mean: E[y]_c = (W @ colsum(patches))/M.
    # Tiny (Cout,K)x(K,1) matvec fused by XLA; removes one (TC, M) XLU pass.
    col_sum = jnp.sum(patches, axis=1, keepdims=True)       # (K, 1)
    mean_c = (w2 @ col_sum) * inv_m                          # (Cout, 1) f32

    gamma2 = gamma.reshape(Cout, 1).astype(jnp.float32)
    beta2 = beta.reshape(Cout, 1).astype(jnp.float32)

    if use_bf16_matmul:
        # Peak-rate MXU path on v5e/v6e/v7x; accumulation stays f32 in-kernel.
        # (Loosen the demo's 1e-4 allclose when turning this on.)
        patches_mm = patches.astype(jnp.bfloat16)
        w2_mm = w2.astype(jnp.bfloat16)
    else:
        patches_mm = patches
        w2_mm = w2

    # Channel tile: per-channel BN stats make Cout tiles fully independent, so
    # the single grid axis is "parallel".
    tco = min(Cout, 128)
    if Cout % tco != 0 or (tco % 8 != 0 and tco != Cout):
        tco = Cout
    grid = (Cout // tco,)

    out_itemsize = jnp.dtype(x_nchw.dtype).itemsize
    in_itemsize = jnp.dtype(patches_mm.dtype).itemsize

    # Explicit scoped-VMEM limit: resident patches (double-buffered by default)
    # + double-buffered output/weight/scalar tiles, with headroom, clamped to
    # v7x's 64 MiB physical VMEM.
    vmem_need = (2 * K * Mp * in_itemsize
                 + 2 * tco * Mp * out_itemsize
                 + 2 * tco * K * in_itemsize
                 + 6 * tco * 4
                 + (1 << 20))
    vmem_limit = int(min(max(vmem_need, 32 << 20), 64 << 20))

    cost = pl.CostEstimate(
        flops=int(2 * Cout * K * Mp + 8 * Cout * Mp),
        transcendentals=int(Cout * Mp),
        bytes_accessed=int(K * Mp * in_itemsize + Cout * K * in_itemsize
                           + Cout * Mp * out_itemsize + 3 * Cout * 4),
    )

    kernel = functools.partial(conv_bn_silu_kernel, eps=eps, inv_m=inv_m)

    out2d = pl.pallas_call(
        kernel,
        out_shape=jax.ShapeDtypeStruct((Cout, Mp), x_nchw.dtype),
        grid_spec=pltpu.PrefetchScalarGridSpec(
            num_scalar_prefetch=0,
            grid=grid,
            in_specs=[
                pl.BlockSpec((tco, K), lambda i: (i, 0)),    # weights tile
                pl.BlockSpec((K, Mp), lambda i: (0, 0)),     # patches (resident)
                pl.BlockSpec((tco, 1), lambda i: (i, 0)),    # precomputed mean
                pl.BlockSpec((tco, 1), lambda i: (i, 0)),    # gamma tile
                pl.BlockSpec((tco, 1), lambda i: (i, 0)),    # beta tile
            ],
            out_specs=pl.BlockSpec((tco, Mp), lambda i: (i, 0)),
        ),
        compiler_params=pltpu.CompilerParams(
            dimension_semantics=("parallel",),
            vmem_limit_bytes=vmem_limit),
        cost_estimate=cost,
    )(w2_mm, patches_mm, mean_c, gamma2, beta2)

    # Crop the lane padding, then a tiny (N, Cout) axis swap on the final result.
    out2d = out2d[:, :M]
    return out2d.reshape(Cout, N, Ho, Wo).transpose(1, 0, 2, 3)


def reference_forward(x_nchw, w_oihw, gamma, beta, *, stride=1, padding=0, eps=1e-5):
    """Pure-JAX reference mirroring PyTorch Conv2d + BatchNorm2d(train) + SiLU."""
    out = jax.lax.conv_general_dilated(
        x_nchw, w_oihw,
        window_strides=(stride, stride),
        padding=[(padding, padding), (padding, padding)],
        dimension_numbers=("NCHW", "OIHW", "NCHW"))
    mean = jnp.mean(out, axis=(0, 2, 3), keepdims=True)
    var = jnp.mean((out - mean) ** 2, axis=(0, 2, 3), keepdims=True)
    y = (out - mean) * jax.lax.rsqrt(var + eps) * gamma.reshape(1, -1, 1, 1) \
        + beta.reshape(1, -1, 1, 1)
    return y * jax.nn.sigmoid(y)


if __name__ == "__main__":
    # ConvBlock(in_channels=4, out_channels=8, kernel_size=3, stride=1, padding=0)
    N, Cin, H, W = 2, 4, 16, 16
    Cout, Kk, stride, padding = 8, 3, 1, 0

    key = jax.random.PRNGKey(0)
    kx, kw = jax.random.split(key)

    x = jax.random.normal(kx, (N, Cin, H, W), dtype=jnp.float32)

    # Deterministic conv weight init (kaiming-uniform-style bound, like nn.Conv2d).
    fan_in = Cin * Kk * Kk
    bound = 1.0 / (fan_in ** 0.5)
    w = jax.random.uniform(kw, (Cout, Cin, Kk, Kk), dtype=jnp.float32,
                           minval=-bound, maxval=bound)

    # BatchNorm2d default init: gamma = 1, beta = 0.
    gamma = jnp.ones((Cout,), dtype=jnp.float32)
    beta = jnp.zeros((Cout,), dtype=jnp.float32)

    out = conv_block_forward(x, w, gamma, beta, stride=stride, padding=padding)
    out = jax.block_until_ready(out)

    ref = reference_forward(x, w, gamma, beta, stride=stride, padding=padding)
    assert out.shape == (N, Cout, H - Kk + 1, W - Kk + 1), out.shape
    assert jnp.allclose(out, ref, atol=1e-4, rtol=1e-4), \
        float(jnp.max(jnp.abs(out - ref)))

    print("KERNEL_OK")
</pallas_src>

<mosaic_0001>
module attributes {stable_mosaic.version = 11 : i64} {
  func.func @conv_bn_silu_kernel(%arg0: i32, %arg1: memref<8x36xf32, #tpu.memory_space<vmem>>, %arg2: memref<36x512xf32, #tpu.memory_space<vmem>>, %arg3: memref<8x1xf32, #tpu.memory_space<vmem>>, %arg4: memref<8x1xf32, #tpu.memory_space<vmem>>, %arg5: memref<8x1xf32, #tpu.memory_space<vmem>>, %arg6: memref<8x512xf32, #tpu.memory_space<vmem>>) attributes {dimension_semantics = [#tpu.dimension_semantics<parallel>], iteration_bounds = array<i64: 1>, scalar_prefetch = 0 : i64, scratch_operands = 0 : i64, tpu.core_type = #tpu.core_type<tc>, window_params = [{transform_indices = @transform_0, window_bounds = array<i64: 8, 36>}, {pipeline_mode = #tpu.pipeline_mode<synchronous>, transform_indices = @transform_1, window_bounds = array<i64: 36, 512>}, {transform_indices = @transform_2, window_bounds = array<i64: 8, 1>}, {transform_indices = @transform_3, window_bounds = array<i64: 8, 1>}, {transform_indices = @transform_4, window_bounds = array<i64: 8, 1>}, {transform_indices = @transform_5, window_bounds = array<i64: 8, 512>}]} {
    %c0 = arith.constant 0 : index
    %c0_0 = arith.constant 0 : index
    %0 = vector.load %arg1[%c0, %c0_0] : memref<8x36xf32, #tpu.memory_space<vmem>>, vector<8x36xf32>
    %c0_1 = arith.constant 0 : index
    %c0_2 = arith.constant 0 : index
    %1 = vector.load %arg2[%c0_1, %c0_2] : memref<36x512xf32, #tpu.memory_space<vmem>>, vector<36x512xf32>
    %cst = arith.constant dense<0.000000e+00> : vector<8x512xf32>
    %2 = tpu.matmul %0, %1, %cst {dimension_numbers = #tpu.dot_dimension_numbers<[1], [0], [0], [1], [0, 0, 1, 1], [], []>} : vector<8x36xf32>, vector<36x512xf32>, vector<8x512xf32> -> vector<8x512xf32>
    %c0_3 = arith.constant 0 : index
    %c0_4 = arith.constant 0 : index
    %3 = vector.load %arg3[%c0_3, %c0_4] : memref<8x1xf32, #tpu.memory_space<vmem>>, vector<8x1xf32>
    %4 = arith.mulf %2, %2 : vector<8x512xf32>
    %cst_5 = arith.constant dense<0.000000e+00> : vector<8xf32>
    %5 = vector.multi_reduction <add>, %4, %cst_5 [1] : vector<8x512xf32> to vector<8xf32>
    %6 = vector.shape_cast %5 : vector<8xf32> to vector<8x1xf32>
    %cst_6 = arith.constant 0.00255102036 : f32
    %7 = vector.broadcast %cst_6 : f32 to vector<8x1xf32>
    %8 = arith.mulf %6, %7 : vector<8x1xf32>
    %9 = arith.mulf %3, %3 : vector<8x1xf32>
    %10 = arith.subf %8, %9 : vector<8x1xf32>
    %cst_7 = arith.constant 0.000000e+00 : f32
    %11 = vector.broadcast %cst_7 : f32 to vector<8x1xf32>
    %12 = arith.maximumf %10, %11 : vector<8x1xf32>
    %c0_8 = arith.constant 0 : index
    %c0_9 = arith.constant 0 : index
    %13 = vector.load %arg4[%c0_8, %c0_9] : memref<8x1xf32, #tpu.memory_space<vmem>>, vector<8x1xf32>
    %cst_10 = arith.constant 9.99999974E-6 : f32
    %14 = vector.broadcast %cst_10 : f32 to vector<8x1xf32>
    %15 = arith.addf %12, %14 : vector<8x1xf32>
    %16 = math.rsqrt %15 : vector<8x1xf32>
    %17 = arith.mulf %13, %16 : vector<8x1xf32>
    %c0_11 = arith.constant 0 : index
    %c0_12 = arith.constant 0 : index
    %18 = vector.load %arg5[%c0_11, %c0_12] : memref<8x1xf32, #tpu.memory_space<vmem>>, vector<8x1xf32>
    %19 = arith.mulf %3, %17 : vector<8x1xf32>
    %20 = arith.subf %18, %19 : vector<8x1xf32>
    %21 = vector.broadcast %17 : vector<8x1xf32> to vector<8x512xf32>
    %22 = arith.mulf %2, %21 : vector<8x512xf32>
    %23 = vector.broadcast %20 : vector<8x1xf32> to vector<8x512xf32>
    %24 = arith.addf %22, %23 : vector<8x512xf32>
    %cst_13 = arith.constant 5.000000e-01 : f32
    %25 = vector.broadcast %cst_13 : f32 to vector<8x512xf32>
    %26 = arith.mulf %25, %24 : vector<8x512xf32>
    %27 = math.tanh %26 : vector<8x512xf32>
    %cst_14 = arith.constant 1.000000e+00 : f32
    %28 = vector.broadcast %cst_14 : f32 to vector<8x512xf32>
    %29 = arith.addf %27, %28 : vector<8x512xf32>
    %cst_15 = arith.constant 5.000000e-01 : f32
    %30 = vector.broadcast %cst_15 : f32 to vector<8x512xf32>
    %31 = arith.mulf %30, %29 : vector<8x512xf32>
    %32 = arith.mulf %24, %31 : vector<8x512xf32>
    %c0_16 = arith.constant 0 : index
    %c0_17 = arith.constant 0 : index
    %33 = vector.load %arg6[%c0_16, %c0_17] : memref<8x512xf32, #tpu.memory_space<vmem>>, vector<8x512xf32>
    tpu.vector_store %arg6[%c0_16, %c0_17], %32 {strides = array<i32>} : memref<8x512xf32, #tpu.memory_space<vmem>>, vector<8x512xf32>,
    return
  }
  func.func @transform_0(%arg0: i32) -> (i32, i32) {
    %c0_i32 = arith.constant 0 : i32
    %c0_i32_0 = arith.constant 0 : i32
    return %arg0, %c0_i32 : i32, i32
  }
  func.func @transform_1(%arg0: i32) -> (i32, i32) {
    %c0_i32 = arith.constant 0 : i32
    %c0_i32_0 = arith.constant 0 : i32
    %c0_i32_1 = arith.constant 0 : i32
    return %c0_i32, %c0_i32_0 : i32, i32
  }
  func.func @transform_2(%arg0: i32) -> (i32, i32) {
    %c0_i32 = arith.constant 0 : i32
    %c0_i32_0 = arith.constant 0 : i32
    return %arg0, %c0_i32 : i32, i32
  }
  func.func @transform_3(%arg0: i32) -> (i32, i32) {
    %c0_i32 = arith.constant 0 : i32
    %c0_i32_0 = arith.constant 0 : i32
    return %arg0, %c0_i32 : i32, i32
  }
  func.func @transform_4(%arg0: i32) -> (i32, i32) {
    %c0_i32 = arith.constant 0 : i32
    %c0_i32_0 = arith.constant 0 : i32
    return %arg0, %c0_i32 : i32, i32
  }
  func.func @transform_5(%arg0: i32) -> (i32, i32) {
    %c0_i32 = arith.constant 0 : i32
    %c0_i32_0 = arith.constant 0 : i32
    return %arg0, %c0_i32 : i32, i32
  }
}

</mosaic_0001>

<bundles_post_ra>
// kernel: tpu_custom_call.1
= control target key start
LH: loop header
LB: loop body
LE: loop exit
PB: predicated region body
PF: predicated region fallthrough
CT: control target
= control target key end

     0   :  { %10 = vsyncpa [#allocation3], 0  ;;  %s453_s0 = inlined_call_operand.vmem [shape: f32[8,36], index: 0, kind: input, shape index: {}]   ;;  %s454_s1 = inlined_call_operand.hbm [shape: f32[36,512], index: 1, kind: input, shape index: {}]   ;;  %s455_s2 = inlined_call_operand.vmem [shape: f32[8,1], index: 2, kind: input, shape index: {}]   ;;  %s456_s3 = inlined_call_operand.vmem [shape: f32[8,1], index: 3, kind: input, shape index: {}]   ;;  %s457_s4 = inlined_call_operand.vmem [shape: f32[8,1], index: 4, kind: input, shape index: {}]   ;;  %s458_s5 = inlined_call_operand.hbm [shape: f32[8,512], index: 5, kind: output, shape index: {}]  }
   0x1   :  { %11 = vsyncpa [#allocation4], 0  ;;  %s381_s18 = smov [#allocation2]   ;;  %s333_s22 = scalar_lea.hbm %s454_s1, 2560 }
   0x2   :  { %s19_s19 = sshll.u32 %s381_s18, 4  ;;  %p334_p0 = scmp.ne.s32.totalorder %s454_s1, %s333_s22  ;;  %s20_s19 = int_to_ptr.vmem [resolvable:$true] %s19_s19 }
   0x3   :  { %p337_p1 = scmp.lt.u32.totalorder %s333_s22, %s454_s1 }
   0x5   :  { %p339_p2 = pnand %p337_p1, %p334_p0 }
   0x7   :  { %342 = shalt.err (!%p339_p2)
}
   0x8   :  { %s343_s27 = scalar_lea.vmem %s20_s19, 2560  ;;  %p348_p4 = scmp.lt.s32.totalorder %s20_s19, %s20_s19 }
   0x9   :  { %p344_p3 = scmp.ne.s32.totalorder %s20_s19, %s343_s27  ;;  %p349_p5 = scmp.lt.s32.totalorder %s343_s27, %s343_s27 }
   0xb   :  { %p350_p6 = por %p349_p5, %p348_p4 }
   0xd   :  { %p351_p7 = pnand %p350_p6, %p344_p3 }
   0xf   :  { %354 = shalt.err (!%p351_p7)
}
  0x10   :  { %s382_s28 = smov 512   ;;  %s383_s29 = smov 32  }
  0x11   :  { %25 = dma.hbm_to_vmem [thread:$0]  %s454_s1, 2560, %s20_s19, [#allocation3], %s382_s28, %s382_s28, %s383_s29  }
  0x12   :  { %377 = dma.done.wait [#allocation3], 2560  }
  0x13   :  { %378 = vsyncadd [#allocation3], 4294964736  ;;  %v384_v0 = vmov 0.0   ;;  %v37_v1 = vld [vmem:[#allocation2 + $0x8] sm:$0xff]  ;;  %v36_v3 = vld [vmem:[#allocation2] sm:$0xff]  ;;  %vm60_vm0 = vcmask 1043456  }
  0x14   :  { %137 = vmatprep.mubr.f32.mxu0 %v384_v0  ;;  %208 = vmatprep.mubr.f32.mxu1 %v384_v0  ;;  %v41_v2 = vld [vmem:[#allocation2 + $0x28] sm:$0xff]  ;;  %v40_v5 = vld [vmem:[#allocation2 + $0x20] sm:$0xff]  ;;  %v39_v6 = vld [vmem:[#allocation2 + $0x18] sm:$0xff]  ;;  %vm56_vm1 = vcmask 293888   ;;  %v385_v41 = vmov 0  }
  0x15   :  { %v299_v4 = vpack.c.bf16 %v41_v2, %v37_v1  ;;  %v43_v7 = vld [vmem:[#allocation2 + $0x38] sm:$0xff]  ;;  %v301_v8 = vpack.c.bf16 %v40_v5, %v36_v3  ;;  %v38_v10 = vld [vmem:[#allocation2 + $0x10] sm:$0xff]  ;;  %v45_v12 = vld [vmem:[#allocation2 + $0x48] sm:$0xff]  ;;  %321 = vset.pattern.permute.xlu0 %v385_v41  ;;  %322 = vset.pattern.permute.xlu1 %v385_v41 }
  0x16   :  { %v307_v9 = vpack.c.bf16 %v43_v7, %v39_v6  ;;  %v42_v11 = vld [vmem:[#allocation2 + $0x30] sm:$0xff]  ;;  %v49_v14 = vld [vmem:[#allocation2 + $0x68] sm:$0xff]  ;;  %v44_v15 = vld [vmem:[#allocation2 + $0x40] sm:$0xff] }
  0x17   :  { %300 = vmatprep.subr.bf16.mxu0 %v299_v4  ;;  %v309_v13 = vpack.c.bf16 %v42_v11, %v38_v10  ;;  %v48_v16 = vld [vmem:[#allocation2 + $0x60] sm:$0xff]  ;;  %v303_v17 = vpack.c.bf16 %v49_v14, %v45_v12  ;;  %v47_v19 = vld [vmem:[#allocation2 + $0x58] sm:$0xff]  ;;  %v46_v21 = vld [vmem:[#allocation2 + $0x50] sm:$0xff] }
  0x18   :  { %302 = vmatpush1.bf16.msra.mxu0 %v301_v8  ;;  %308 = vmatprep.subr.bf16.mxu1 %v307_v9  ;;  %v305_v18 = vpack.c.bf16 %v48_v16, %v44_v15  ;;  %v51_v20 = vld [vmem:[#allocation2 + $0x78] sm:$0xff]  ;;  %v50_v23 = vld [vmem:[#allocation2 + $0x70] sm:$0xff]  ;;  %v53_v25 = vld [vmem:[#allocation2 + $0x88] sm:$0xf] }
  0x19   :  { %310 = vmatpush1.bf16.msra.mxu1 %v309_v13  ;;  %v311_v22 = vpack.c.bf16 %v51_v20, %v47_v19  ;;  %304 = vmatprep.subr.bf16.mxu0 %v303_v17  ;;  %v313_v24 = vpack.c.bf16 %v50_v23, %v46_v21  ;;  %v55_v26 = vld [vmem:[#allocation2 + $0x98] sm:$0xf]  ;;  %v52_v27 = vld [vmem:[#allocation2 + $0x80] sm:$0xf]  ;;  %v54_v29 = vld [vmem:[#allocation2 + $0x90] sm:$0xf] }
  0x1a   :  { %v35_v28 = vld [vmem:[%s453_s0] sm:$0xff] }
  0x1b   :  { %312 = vmatprep.subr.bf16.mxu1 %v311_v22  ;;  %v215_v42 = vld [vmem:[%s455_s2] sm:$0xff]  ;;  %s386_s2 = smov [#allocation5]  }
  0x1c   :  { %306 = vmatpush1.bf16.msra.mxu0 %v305_v18  ;;  %v226_v43 = vmul.f32 %v215_v42, %v215_v42  ;;  %v229_v49 = vld [vmem:[%s456_s3] sm:$0xff]  ;;  %s284_s3 = sshll.u32 %s386_s2, 4  ;;  %s285_s3 = int_to_ptr.vmem [resolvable:$true] %s284_s3 }
  0x1d   :  { %314 = vmatpush1.bf16.msra.mxu1 %v313_v24  ;;  %293 = vmatprep.subr.msk.mxu0 %vm60_vm0, %v53_v25  ;;  %v233_v52 = vld [vmem:[%s457_s4] sm:$0xff]  ;;  %s355_s4 = scalar_lea.vmem %s285_s3, 512  ;;  %p360_p9 = scmp.lt.s32.totalorder %s285_s3, %s285_s3 }
  0x1e   :  { %296 = vmatprep.subr.msk.mxu1 %vm60_vm0, %v55_v26  ;;  %p356_p8 = scmp.ne.s32.totalorder %s285_s3, %s355_s4  ;;  %p361_p10 = scmp.lt.s32.totalorder %s355_s4, %s355_s4 }
  0x20   :  { %294 = vmatpush1.msk.msra.mxu0 %vm60_vm0, %v52_v27  ;;  %p362_p11 = por %p361_p10, %p360_p9 }
  0x21   :  { %295 = vmatmul.mubr.msk.f32.vlgmr.msra.gmra.mrb[0].mxu0 %vm56_vm1, %v35_v28  ;;  %297 = vmatpush1.msk.msra.mxu1 %vm60_vm0, %v54_v29 }
  0x22   :  { %298 = vmatmul.mubr.msk.f32.vlgmr.msra.gmra.mrb[0].mxu1 %vm56_vm1, %v35_v28  ;;  %p363_p12 = pnand %p362_p11, %p356_p8 }
  0xf4   :  { %v139_v30 = vpop.f32.mrb[0].mxu0 }
  0xf5   :  { %v216_v31 = vmul.f32 %v139_v30, %v139_v30  ;;  %v141_v32 = vpop.f32.mrb[1].mxu0  ;;  %v210_v33 = vpop.f32.mrb[0].mxu1 }
  0xf6   :  { %v217_v34 = vmul.f32 %v141_v32, %v141_v32  ;;  %v218_v35 = vmul.f32 %v210_v33, %v210_v33  ;;  %v212_v36 = vpop.f32.mrb[1].mxu1 }
  0xf7   :  { %v219_v38 = vmul.f32 %v212_v36, %v212_v36 }
  0xf8   :  { %v220_v37 = vadd.f32 %v217_v34, %v216_v31 }
  0xfa   :  { %v221_v39 = vadd.f32 %v220_v37, %v218_v35 }
  0xfc   :  { %v222_v40 = vadd.f32 %v221_v39, %v219_v38 }
  0xfe   :  { %223 = vadd.xlane.f32.xlu0 %v222_v40 }
 0x18b   :  { %v224_v44 = vpop.xlane.xlu0 %223 }
 0x18c   :  { %v225_v45 = vmul.f32 0.0025510204, %v224_v44 }
 0x18e   :  { %v227_v46 = vsub.f32 %v225_v45, %v226_v43 }
 0x190   :  { %v228_v47 = vmax.f32 %v227_v46, 0.0 }
 0x192   :  { %v230_v48 = vadd.f32 1e-05, %v228_v47 }
 0x194   :  { %323 = vrsqrt.f32 %v230_v48 }
 0x19e   :  { %v324_v50 = vpop.eup %323 }
 0x19f   :  { %v232_v51 = vmul.f32 %v324_v50, %v229_v49 }
 0x1a1   :  { %238 = vperm.xlu0 %321, %v232_v51   ;;  %v234_v53 = vmul.f32 %v232_v51, %v215_v42 }
 0x1a3   :  { %v235_v54 = vsub.f32 %v233_v52, %v234_v53 }
 0x1a5   :  { %247 = vperm.xlu1 %322, %v235_v54  }
 0x220   :  { %v239_v55 = vpop.permute.xlu0 %238 }
 0x221   :  { %v241_v56 = vmul.f32 %v239_v55, %v139_v30  ;;  %v242_v57 = vmul.f32 %v239_v55, %v141_v32  ;;  %v243_v58 = vmul.f32 %v239_v55, %v210_v33  ;;  %v244_v59 = vmul.f32 %v239_v55, %v212_v36 }
 0x224   :  { %v248_v60 = vpop.permute.xlu1 %247 }
 0x225   :  { %v250_v61 = vadd.f32 %v248_v60, %v241_v56  ;;  %v251_v62 = vadd.f32 %v248_v60, %v242_v57  ;;  %v252_v63 = vadd.f32 %v248_v60, %v243_v58  ;;  %v253_v0 = vadd.f32 %v248_v60, %v244_v59 }
 0x227   :  { %v254_v1 = vmul.f32 0.5, %v250_v61  ;;  %v255_v2 = vmul.f32 0.5, %v251_v62  ;;  %v256_v3 = vmul.f32 0.5, %v252_v63  ;;  %v257_v4 = vmul.f32 0.5, %v253_v0 }
 0x229   :  { %325 = vtanh.f32 %v254_v1 }
 0x22a   :  { %327 = vtanh.f32 %v255_v2 }
 0x22b   :  { %329 = vtanh.f32 %v256_v3 }
 0x22c   :  { %331 = vtanh.f32 %v257_v4 }
 0x233   :  { %v326_v5 = vpop.eup %325 }
 0x234   :  { %v328_v6 = vpop.eup %327  ;;  %v262_v7 = vadd.f32 1.0, %v326_v5 }
 0x235   :  { %v330_v8 = vpop.eup %329  ;;  %v263_v9 = vadd.f32 1.0, %v328_v6 }
 0x236   :  { %v332_v10 = vpop.eup %331  ;;  %v264_v11 = vadd.f32 1.0, %v330_v8  ;;  %v266_v12 = vmul.f32 0.5, %v262_v7 }
 0x237   :  { %v265_v13 = vadd.f32 1.0, %v332_v10  ;;  %v267_v14 = vmul.f32 0.5, %v263_v9 }
 0x238   :  { %v268_v15 = vmul.f32 0.5, %v264_v11  ;;  %v270_v16 = vmul.f32 %v266_v12, %v250_v61 }
 0x239   :  { %v269_v17 = vmul.f32 0.5, %v265_v13  ;;  %v271_v18 = vmul.f32 %v267_v14, %v251_v62 }
 0x23a   :  { %v272_v19 = vmul.f32 %v268_v15, %v252_v63  ;;  %274 = vst [vmem:[#allocation5] sm:$0xff] %v270_v16 }
 0x23b   :  { %v273_v20 = vmul.f32 %v269_v17, %v253_v0  ;;  %275 = vst [vmem:[#allocation5 + $0x8] sm:$0xff] %v271_v18 }
 0x23c   :  { %276 = vst [vmem:[#allocation5 + $0x10] sm:$0xff] %v272_v19 }
 0x23d   :  { %277 = vst [vmem:[#allocation5 + $0x18] sm:$0xff] %v273_v20 }
 0x23e   :  { %366 = shalt.err (!%p363_p12)
}
 0x23f   :  { %s367_s15 = scalar_lea.hbm %s458_s5, 512 }
 0x240   :  { %p368_p13 = scmp.ne.s32.totalorder %s458_s5, %s367_s15  ;;  %p371_p0 = scmp.lt.u32.totalorder %s367_s15, %s458_s5 }
 0x242   :  { %p373_p1 = pnand %p371_p0, %p368_p13 }
 0x244   :  { %376 = shalt.err (!%p373_p1)
}
 0x245   :  { %287 = dma.vmem_to_hbm [thread:$0]  %s285_s3, 512, %s458_s5, [#allocation4]  }
 0x246   :  { %379 = dma.done.wait [#allocation4], 512  }
 0x247   :  { %380 = vsyncadd [#allocation4], 4294966784 }
 0x248   :  { %291 = vsyncpa [#allocation3], 1 }
 0x249   :  { %292 = vsyncpa [#allocation4], 1 }

</bundles_post_ra>
